<compile_context>
chip_gen: v7x
topology: tpu7x:2x2x1
jax: 0.10.0
libtpu: 0.0.40
codegen_flags: <defaults>
</compile_context>

<pallas_src>
import functools

import jax
import jax.numpy as jnp
from jax.experimental import pallas as pl
from jax.experimental.pallas import tpu as pltpu

_LANE = 128
_SUBLANE = 8


def _fused_mlp_kernel(*refs, n_layers: int, lane_dense: bool):
    """refs = (x_ref, w0, b0, w1, b1, ..., o_ref). Whole MLP on one batch tile.

    x/w refs are bf16 (MXU-native operands), biases f32; accumulation, bias add
    and ReLU are f32.  If lane_dense, the output tile is stored transposed
    (d_out, tb) so the batch axis sits on the 128 lanes (unmasked vst).
    """
    x_ref = refs[0]
    o_ref = refs[-1]
    param_refs = refs[1:-1]

    h = x_ref[...]                                       # bf16 operand
    acc = None
    for i in range(n_layers):
        w = param_refs[2 * i][...]                       # bf16, VMEM-resident
        b = param_refs[2 * i + 1][...]                   # f32 (1, dout)
        acc = jnp.dot(h, w, preferred_element_type=jnp.float32) + b
        if i < n_layers - 1:
            acc = jnp.maximum(acc, 0.0)                  # f32 VPU ReLU
            h = acc.astype(jnp.bfloat16)                 # back to bf16 for next MXU pass
    if lane_dense:
        o_ref[...] = acc.T.astype(o_ref.dtype)           # (d_out, tb): lane-dense store
    else:
        o_ref[...] = acc.astype(o_ref.dtype)


def _choose_tiling(batch: int):
    """Return (tb, padded_batch).

    Prefers lane-dense tiles (multiple of 128) in the 512-1024 row range and
    always yields >= 2 grid steps (v7x TC sharding, pipelining); pads the batch
    when it doesn't tile evenly.
    """
    if batch >= 2 * _LANE:
        for tb in (1024, 512, 256, _LANE):
            if batch % tb == 0 and batch // tb >= 2:
                return tb, batch
        padded = -(-batch // _LANE) * _LANE
        if padded // _LANE < 2:
            padded = 2 * _LANE
        return _LANE, padded
    # Small batches: multiple-of-8 tiles, still >= 2 grid steps (pad if needed).
    tb = max(_SUBLANE, ((batch // 2) // _SUBLANE) * _SUBLANE)
    padded = -(-batch // tb) * tb
    if padded // tb < 2:
        padded = 2 * tb
    return tb, padded


def _vmem_limit_bytes(tb: int, layer_dims):
    """Explicit VMEM budget, clamped to v7x's 64 MiB physical capacity."""
    d_in, d_out = layer_dims[0], layer_dims[-1]
    widest = max(layer_dims)
    b = 2 * tb * d_in * 2                                # x tile, 2 bufs, bf16
    b += 2 * tb * d_out * 4                              # out tile, 2 bufs, f32
    for din, dout in zip(layer_dims[:-1], layer_dims[1:]):
        b += 2 * (din * dout * 2 + dout * 4)             # weights/bias (worst case 2 bufs)
    b += 6 * tb * widest * 4                             # live activations / accumulators
    return min(max(2 * b, 32 << 20), 64 << 20)


def custom_net_forward(x, params):
    """Fused forward pass of CustomNet (one pallas_call for the whole MLP)."""
    batch, d_in = x.shape
    n_layers = len(params)
    layer_dims = [d_in] + [w.shape[1] for (w, _) in params]
    d_out = layer_dims[-1]
    out_dtype = x.dtype

    tb, padded = _choose_tiling(batch)
    grid = (padded // tb,)
    lane_dense = (d_out < _LANE) and (tb % _LANE == 0)

    x_p = x
    if padded != batch:
        x_p = jnp.pad(x, ((0, padded - batch), (0, 0)))
    x_p = x_p.astype(jnp.bfloat16)                       # MXU-native, halves x DMA bytes

    flat_params = []
    for w, b in params:
        flat_params.append(jnp.asarray(w).astype(jnp.bfloat16))        # (in, out)
        flat_params.append(jnp.asarray(b).astype(jnp.float32).reshape(1, -1))

    if lane_dense:
        out_shape = jax.ShapeDtypeStruct((d_out, padded), out_dtype)
        out_specs = pl.BlockSpec((d_out, tb), lambda i: (0, i))
    else:
        out_shape = jax.ShapeDtypeStruct((padded, d_out), out_dtype)
        out_specs = pl.BlockSpec((tb, d_out), lambda i: (i, 0))

    kernel = functools.partial(_fused_mlp_kernel, n_layers=n_layers,
                               lane_dense=lane_dense)
    vmem_bytes = _vmem_limit_bytes(tb, layer_dims)

    def _call(single_buffer_weights: bool):
        # Grid-invariant weights/biases: constant index_map; single-buffer them
        # (double-buffering a constant block only wastes VMEM on v7x's 64 MiB).
        wkw = {"pipeline_mode": pl.Buffered(1)} if single_buffer_weights else {}
        in_specs = [pl.BlockSpec((tb, d_in), lambda i: (i, 0))]
        for din, dout in zip(layer_dims[:-1], layer_dims[1:]):
            in_specs.append(pl.BlockSpec((din, dout), lambda i: (0, 0), **wkw))
            in_specs.append(pl.BlockSpec((1, dout), lambda i: (0, 0), **wkw))
        return pl.pallas_call(
            kernel,
            out_shape=out_shape,
            grid=grid,
            in_specs=in_specs,
            out_specs=out_specs,
            compiler_params=pltpu.CompilerParams(
                dimension_semantics=("parallel",),
                vmem_limit_bytes=vmem_bytes,
            ),
        )(x_p, *flat_params)

    try:
        out = _call(True)
    except Exception:
        # Fallback for JAX versions without BlockSpec.pipeline_mode support.
        out = _call(False)

    if lane_dense:
        out = out.T                                      # tiny (d_out, batch) slab
    return out[:batch]


def init_params(layers, key):
    """Deterministic init mimicking nn.Linear default (uniform +-1/sqrt(fan_in))."""
    params = []
    for i in range(len(layers) - 1):
        fan_in, fan_out = layers[i], layers[i + 1]
        key, kw, kb = jax.random.split(key, 3)
        bound = 1.0 / jnp.sqrt(fan_in)
        # weight stored as (in, out) == PyTorch weight.T ; bias stored as (1, out)
        w = jax.random.uniform(kw, (fan_in, fan_out), jnp.float32, -bound, bound)
        b = jax.random.uniform(kb, (1, fan_out), jnp.float32, -bound, bound)
        params.append((w, b))
    return params


def custom_net_ref(x, params, mxu_bf16=False):
    """Pure-JAX reference. mxu_bf16=True mimics the kernel's bf16-operand matmuls."""
    n = len(params)
    h = x
    for i, (w, b) in enumerate(params):
        b2 = jnp.asarray(b).reshape(1, -1).astype(jnp.float32)
        if mxu_bf16:
            h = jnp.dot(h.astype(jnp.bfloat16), jnp.asarray(w).astype(jnp.bfloat16),
                        preferred_element_type=jnp.float32) + b2
        else:
            h = h @ w + b2
        if i < n - 1:
            h = jnp.maximum(h, 0.0)
    return h.astype(x.dtype)


if __name__ == "__main__":
    # CustomNet(layers=[16, 32, 32, 8]) on a batch of 256 inputs.
    # _choose_tiling(256) -> tb=128, grid=(2,): lane-dense transposed output,
    # weights VMEM-resident, batch axis "parallel" (2-TC sharding on v7x).
    layers = [16, 32, 32, 8]
    batch = 256

    key = jax.random.PRNGKey(0)
    key, kx = jax.random.split(key)
    x = jax.random.normal(kx, (batch, layers[0]), jnp.float32)
    params = init_params(layers, key)

    out = jax.block_until_ready(custom_net_forward(x, params))
    assert out.shape == (batch, layers[-1])

    ref_bf16 = custom_net_ref(x, params, mxu_bf16=True)   # matches kernel numerics
    ref_f32 = custom_net_ref(x, params, mxu_bf16=False)   # PyTorch f32 semantics
    assert jnp.allclose(out, ref_bf16, atol=1e-3, rtol=1e-3), "mismatch vs bf16-matched reference"
    assert jnp.allclose(out, ref_f32, atol=5e-2, rtol=5e-2), "mismatch vs f32 reference"

    print("KERNEL_OK")
</pallas_src>

<mosaic_0001>
module attributes {stable_mosaic.version = 11 : i64} {
  func.func @_fused_mlp_kernel(%arg0: i32, %arg1: memref<128x16xbf16, #tpu.memory_space<vmem>>, %arg2: memref<16x32xbf16, #tpu.memory_space<vmem>>, %arg3: memref<1x32xf32, #tpu.memory_space<vmem>>, %arg4: memref<32x32xbf16, #tpu.memory_space<vmem>>, %arg5: memref<1x32xf32, #tpu.memory_space<vmem>>, %arg6: memref<32x8xbf16, #tpu.memory_space<vmem>>, %arg7: memref<1x8xf32, #tpu.memory_space<vmem>>, %arg8: memref<8x128xf32, #tpu.memory_space<vmem>>) attributes {dimension_semantics = [#tpu.dimension_semantics<parallel>], iteration_bounds = array<i64: 2>, scalar_prefetch = 0 : i64, scratch_operands = 0 : i64, tpu.core_type = #tpu.core_type<tc>, window_params = [{transform_indices = @transform_0, window_bounds = array<i64: 128, 16>}, {pipeline_mode = #tpu.pipeline_mode<synchronous>, transform_indices = @transform_1, window_bounds = array<i64: 16, 32>}, {pipeline_mode = #tpu.pipeline_mode<synchronous>, transform_indices = @transform_2, window_bounds = array<i64: 1, 32>}, {pipeline_mode = #tpu.pipeline_mode<synchronous>, transform_indices = @transform_3, window_bounds = array<i64: 32, 32>}, {pipeline_mode = #tpu.pipeline_mode<synchronous>, transform_indices = @transform_4, window_bounds = array<i64: 1, 32>}, {pipeline_mode = #tpu.pipeline_mode<synchronous>, transform_indices = @transform_5, window_bounds = array<i64: 32, 8>}, {pipeline_mode = #tpu.pipeline_mode<synchronous>, transform_indices = @transform_6, window_bounds = array<i64: 1, 8>}, {transform_indices = @transform_7, window_bounds = array<i64: 8, 128>}]} {
    %c0 = arith.constant 0 : index
    %c0_0 = arith.constant 0 : index
    %0 = vector.load %arg1[%c0, %c0_0] : memref<128x16xbf16, #tpu.memory_space<vmem>>, vector<128x16xbf16>
    %c0_1 = arith.constant 0 : index
    %c0_2 = arith.constant 0 : index
    %1 = vector.load %arg2[%c0_1, %c0_2] : memref<16x32xbf16, #tpu.memory_space<vmem>>, vector<16x32xbf16>
    %c0_3 = arith.constant 0 : index
    %c0_4 = arith.constant 0 : index
    %2 = vector.load %arg3[%c0_3, %c0_4] : memref<1x32xf32, #tpu.memory_space<vmem>>, vector<1x32xf32>
    %cst = arith.constant dense<0.000000e+00> : vector<128x32xf32>
    %3 = tpu.matmul %0, %1, %cst {dimension_numbers = #tpu.dot_dimension_numbers<[1], [0], [0], [1], [0, 0, 1, 1], [], []>} : vector<128x16xbf16>, vector<16x32xbf16>, vector<128x32xf32> -> vector<128x32xf32>
    %4 = vector.broadcast %2 : vector<1x32xf32> to vector<128x32xf32>
    %5 = arith.addf %3, %4 : vector<128x32xf32>
    %cst_5 = arith.constant 0.000000e+00 : f32
    %6 = vector.broadcast %cst_5 : f32 to vector<128x32xf32>
    %7 = arith.maximumf %5, %6 : vector<128x32xf32>
    %8 = arith.truncf %7 : vector<128x32xf32> to vector<128x32xbf16>
    %c0_6 = arith.constant 0 : index
    %c0_7 = arith.constant 0 : index
    %9 = vector.load %arg4[%c0_6, %c0_7] : memref<32x32xbf16, #tpu.memory_space<vmem>>, vector<32x32xbf16>
    %c0_8 = arith.constant 0 : index
    %c0_9 = arith.constant 0 : index
    %10 = vector.load %arg5[%c0_8, %c0_9] : memref<1x32xf32, #tpu.memory_space<vmem>>, vector<1x32xf32>
    %cst_10 = arith.constant dense<0.000000e+00> : vector<128x32xf32>
    %11 = tpu.matmul %8, %9, %cst_10 {dimension_numbers = #tpu.dot_dimension_numbers<[1], [0], [0], [1], [0, 0, 1, 1], [], []>} : vector<128x32xbf16>, vector<32x32xbf16>, vector<128x32xf32> -> vector<128x32xf32>
    %12 = vector.broadcast %10 : vector<1x32xf32> to vector<128x32xf32>
    %13 = arith.addf %11, %12 : vector<128x32xf32>
    %cst_11 = arith.constant 0.000000e+00 : f32
    %14 = vector.broadcast %cst_11 : f32 to vector<128x32xf32>
    %15 = arith.maximumf %13, %14 : vector<128x32xf32>
    %16 = arith.truncf %15 : vector<128x32xf32> to vector<128x32xbf16>
    %c0_12 = arith.constant 0 : index
    %c0_13 = arith.constant 0 : index
    %17 = vector.load %arg6[%c0_12, %c0_13] : memref<32x8xbf16, #tpu.memory_space<vmem>>, vector<32x8xbf16>
    %c0_14 = arith.constant 0 : index
    %c0_15 = arith.constant 0 : index
    %18 = vector.load %arg7[%c0_14, %c0_15] : memref<1x8xf32, #tpu.memory_space<vmem>>, vector<1x8xf32>
    %cst_16 = arith.constant dense<0.000000e+00> : vector<128x8xf32>
    %19 = tpu.matmul %16, %17, %cst_16 {dimension_numbers = #tpu.dot_dimension_numbers<[1], [0], [0], [1], [0, 0, 1, 1], [], []>} : vector<128x32xbf16>, vector<32x8xbf16>, vector<128x8xf32> -> vector<128x8xf32>
    %20 = vector.broadcast %18 : vector<1x8xf32> to vector<128x8xf32>
    %21 = arith.addf %19, %20 : vector<128x8xf32>
    %22 = tpu.transpose %21, [1, 0] : vector<128x8xf32> -> vector<8x128xf32>
    %c0_17 = arith.constant 0 : index
    %c0_18 = arith.constant 0 : index
    %23 = vector.load %arg8[%c0_17, %c0_18] : memref<8x128xf32, #tpu.memory_space<vmem>>, vector<8x128xf32>
    tpu.vector_store %arg8[%c0_17, %c0_18], %22 {strides = array<i32>} : memref<8x128xf32, #tpu.memory_space<vmem>>, vector<8x128xf32>,
    return
  }
  func.func @transform_0(%arg0: i32) -> (i32, i32) {
    %c0_i32 = arith.constant 0 : i32
    %c0_i32_0 = arith.constant 0 : i32
    return %arg0, %c0_i32 : i32, i32
  }
  func.func @transform_1(%arg0: i32) -> (i32, i32) {
    %c0_i32 = arith.constant 0 : i32
    %c0_i32_0 = arith.constant 0 : i32
    %c0_i32_1 = arith.constant 0 : i32
    return %c0_i32, %c0_i32_0 : i32, i32
  }
  func.func @transform_2(%arg0: i32) -> (i32, i32) {
    %c0_i32 = arith.constant 0 : i32
    %c0_i32_0 = arith.constant 0 : i32
    %c0_i32_1 = arith.constant 0 : i32
    return %c0_i32, %c0_i32_0 : i32, i32
  }
  func.func @transform_3(%arg0: i32) -> (i32, i32) {
    %c0_i32 = arith.constant 0 : i32
    %c0_i32_0 = arith.constant 0 : i32
    %c0_i32_1 = arith.constant 0 : i32
    return %c0_i32, %c0_i32_0 : i32, i32
  }
  func.func @transform_4(%arg0: i32) -> (i32, i32) {
    %c0_i32 = arith.constant 0 : i32
    %c0_i32_0 = arith.constant 0 : i32
    %c0_i32_1 = arith.constant 0 : i32
    return %c0_i32, %c0_i32_0 : i32, i32
  }
  func.func @transform_5(%arg0: i32) -> (i32, i32) {
    %c0_i32 = arith.constant 0 : i32
    %c0_i32_0 = arith.constant 0 : i32
    %c0_i32_1 = arith.constant 0 : i32
    return %c0_i32, %c0_i32_0 : i32, i32
  }
  func.func @transform_6(%arg0: i32) -> (i32, i32) {
    %c0_i32 = arith.constant 0 : i32
    %c0_i32_0 = arith.constant 0 : i32
    %c0_i32_1 = arith.constant 0 : i32
    return %c0_i32, %c0_i32_0 : i32, i32
  }
  func.func @transform_7(%arg0: i32) -> (i32, i32) {
    %c0_i32 = arith.constant 0 : i32
    %c0_i32_0 = arith.constant 0 : i32
    return %c0_i32, %arg0 : i32, i32
  }
}

module attributes {stable_mosaic.version = 11 : i64} {
  func.func @_fused_mlp_kernel(%arg0: i32, %arg1: memref<128x16xbf16, #tpu.memory_space<vmem>>, %arg2: memref<16x32xbf16, #tpu.memory_space<vmem>>, %arg3: memref<1x32xf32, #tpu.memory_space<vmem>>, %arg4: memref<32x32xbf16, #tpu.memory_space<vmem>>, %arg5: memref<1x32xf32, #tpu.memory_space<vmem>>, %arg6: memref<32x8xbf16, #tpu.memory_space<vmem>>, %arg7: memref<1x8xf32, #tpu.memory_space<vmem>>, %arg8: memref<8x128xf32, #tpu.memory_space<vmem>>) attributes {dimension_semantics = [#tpu.dimension_semantics<parallel>], iteration_bounds = array<i64: 2>, scalar_prefetch = 0 : i64, scratch_operands = 0 : i64, tpu.core_type = #tpu.core_type<tc>, window_params = [{transform_indices = @transform_0, window_bounds = array<i64: 128, 16>}, {pipeline_mode = #tpu.pipeline_mode<synchronous>, transform_indices = @transform_1, window_bounds = array<i64: 16, 32>}, {pipeline_mode = #tpu.pipeline_mode<synchronous>, transform_indices = @transform_2, window_bounds = array<i64: 1, 32>}, {pipeline_mode = #tpu.pipeline_mode<synchronous>, transform_indices = @transform_3, window_bounds = array<i64: 32, 32>}, {pipeline_mode = #tpu.pipeline_mode<synchronous>, transform_indices = @transform_4, window_bounds = array<i64: 1, 32>}, {pipeline_mode = #tpu.pipeline_mode<synchronous>, transform_indices = @transform_5, window_bounds = array<i64: 32, 8>}, {pipeline_mode = #tpu.pipeline_mode<synchronous>, transform_indices = @transform_6, window_bounds = array<i64: 1, 8>}, {transform_indices = @transform_7, window_bounds = array<i64: 8, 128>}]} {
    %c0 = arith.constant 0 : index
    %c0_0 = arith.constant 0 : index
    %0 = vector.load %arg1[%c0, %c0_0] : memref<128x16xbf16, #tpu.memory_space<vmem>>, vector<128x16xbf16>
    %c0_1 = arith.constant 0 : index
    %c0_2 = arith.constant 0 : index
    %1 = vector.load %arg2[%c0_1, %c0_2] : memref<16x32xbf16, #tpu.memory_space<vmem>>, vector<16x32xbf16>
    %c0_3 = arith.constant 0 : index
    %c0_4 = arith.constant 0 : index
    %2 = vector.load %arg3[%c0_3, %c0_4] : memref<1x32xf32, #tpu.memory_space<vmem>>, vector<1x32xf32>
    %cst = arith.constant dense<0.000000e+00> : vector<128x32xf32>
    %3 = tpu.matmul %0, %1, %cst {dimension_numbers = #tpu.dot_dimension_numbers<[1], [0], [0], [1], [0, 0, 1, 1], [], []>} : vector<128x16xbf16>, vector<16x32xbf16>, vector<128x32xf32> -> vector<128x32xf32>
    %4 = vector.broadcast %2 : vector<1x32xf32> to vector<128x32xf32>
    %5 = arith.addf %3, %4 : vector<128x32xf32>
    %cst_5 = arith.constant 0.000000e+00 : f32
    %6 = vector.broadcast %cst_5 : f32 to vector<128x32xf32>
    %7 = arith.maximumf %5, %6 : vector<128x32xf32>
    %8 = arith.truncf %7 : vector<128x32xf32> to vector<128x32xbf16>
    %c0_6 = arith.constant 0 : index
    %c0_7 = arith.constant 0 : index
    %9 = vector.load %arg4[%c0_6, %c0_7] : memref<32x32xbf16, #tpu.memory_space<vmem>>, vector<32x32xbf16>
    %c0_8 = arith.constant 0 : index
    %c0_9 = arith.constant 0 : index
    %10 = vector.load %arg5[%c0_8, %c0_9] : memref<1x32xf32, #tpu.memory_space<vmem>>, vector<1x32xf32>
    %cst_10 = arith.constant dense<0.000000e+00> : vector<128x32xf32>
    %11 = tpu.matmul %8, %9, %cst_10 {dimension_numbers = #tpu.dot_dimension_numbers<[1], [0], [0], [1], [0, 0, 1, 1], [], []>} : vector<128x32xbf16>, vector<32x32xbf16>, vector<128x32xf32> -> vector<128x32xf32>
    %12 = vector.broadcast %10 : vector<1x32xf32> to vector<128x32xf32>
    %13 = arith.addf %11, %12 : vector<128x32xf32>
    %cst_11 = arith.constant 0.000000e+00 : f32
    %14 = vector.broadcast %cst_11 : f32 to vector<128x32xf32>
    %15 = arith.maximumf %13, %14 : vector<128x32xf32>
    %16 = arith.truncf %15 : vector<128x32xf32> to vector<128x32xbf16>
    %c0_12 = arith.constant 0 : index
    %c0_13 = arith.constant 0 : index
    %17 = vector.load %arg6[%c0_12, %c0_13] : memref<32x8xbf16, #tpu.memory_space<vmem>>, vector<32x8xbf16>
    %c0_14 = arith.constant 0 : index
    %c0_15 = arith.constant 0 : index
    %18 = vector.load %arg7[%c0_14, %c0_15] : memref<1x8xf32, #tpu.memory_space<vmem>>, vector<1x8xf32>
    %cst_16 = arith.constant dense<0.000000e+00> : vector<128x8xf32>
    %19 = tpu.matmul %16, %17, %cst_16 {dimension_numbers = #tpu.dot_dimension_numbers<[1], [0], [0], [1], [0, 0, 1, 1], [], []>} : vector<128x32xbf16>, vector<32x8xbf16>, vector<128x8xf32> -> vector<128x8xf32>
    %20 = vector.broadcast %18 : vector<1x8xf32> to vector<128x8xf32>
    %21 = arith.addf %19, %20 : vector<128x8xf32>
    %22 = tpu.transpose %21, [1, 0] : vector<128x8xf32> -> vector<8x128xf32>
    %c0_17 = arith.constant 0 : index
    %c0_18 = arith.constant 0 : index
    %23 = vector.load %arg8[%c0_17, %c0_18] : memref<8x128xf32, #tpu.memory_space<vmem>>, vector<8x128xf32>
    tpu.vector_store %arg8[%c0_17, %c0_18], %22 {strides = array<i32>} : memref<8x128xf32, #tpu.memory_space<vmem>>, vector<8x128xf32>,
    return
  }
  func.func @transform_0(%arg0: i32) -> (i32, i32) {
    %c0_i32 = arith.constant 0 : i32
    %c0_i32_0 = arith.constant 0 : i32
    return %arg0, %c0_i32 : i32, i32
  }
  func.func @transform_1(%arg0: i32) -> (i32, i32) {
    %c0_i32 = arith.constant 0 : i32
    %c0_i32_0 = arith.constant 0 : i32
    %c0_i32_1 = arith.constant 0 : i32
    return %c0_i32, %c0_i32_0 : i32, i32
  }
  func.func @transform_2(%arg0: i32) -> (i32, i32) {
    %c0_i32 = arith.constant 0 : i32
    %c0_i32_0 = arith.constant 0 : i32
    %c0_i32_1 = arith.constant 0 : i32
    return %c0_i32, %c0_i32_0 : i32, i32
  }
  func.func @transform_3(%arg0: i32) -> (i32, i32) {
    %c0_i32 = arith.constant 0 : i32
    %c0_i32_0 = arith.constant 0 : i32
    %c0_i32_1 = arith.constant 0 : i32
    return %c0_i32, %c0_i32_0 : i32, i32
  }
  func.func @transform_4(%arg0: i32) -> (i32, i32) {
    %c0_i32 = arith.constant 0 : i32
    %c0_i32_0 = arith.constant 0 : i32
    %c0_i32_1 = arith.constant 0 : i32
    return %c0_i32, %c0_i32_0 : i32, i32
  }
  func.func @transform_5(%arg0: i32) -> (i32, i32) {
    %c0_i32 = arith.constant 0 : i32
    %c0_i32_0 = arith.constant 0 : i32
    %c0_i32_1 = arith.constant 0 : i32
    return %c0_i32, %c0_i32_0 : i32, i32
  }
  func.func @transform_6(%arg0: i32) -> (i32, i32) {
    %c0_i32 = arith.constant 0 : i32
    %c0_i32_0 = arith.constant 0 : i32
    %c0_i32_1 = arith.constant 0 : i32
    return %c0_i32, %c0_i32_0 : i32, i32
  }
  func.func @transform_7(%arg0: i32) -> (i32, i32) {
    %c0_i32 = arith.constant 0 : i32
    %c0_i32_0 = arith.constant 0 : i32
    return %c0_i32, %arg0 : i32, i32
  }
}

</mosaic_0001>

<bundles_post_ra>
// kernel: tpu_custom_call.1
= control target key start
LH: loop header
LB: loop body
LE: loop exit
PB: predicated region body
PF: predicated region fallthrough
CT: control target
= control target key end

     0   :  { %12 = vsyncpa [#allocation3], 0  ;;  %s1360_s0 = inlined_call_operand.vmem [shape: bf16[256,16], index: 0, kind: input, shape index: {}]   ;;  %s1361_s1 = inlined_call_operand.vmem [shape: bf16[16,32], index: 1, kind: input, shape index: {}]   ;;  %s1362_s2 = inlined_call_operand.vmem [shape: f32[1,32], index: 2, kind: input, shape index: {}]   ;;  %s1363_s3 = inlined_call_operand.vmem [shape: bf16[32,32], index: 3, kind: input, shape index: {}]   ;;  %s1364_s4 = inlined_call_operand.vmem [shape: f32[1,32], index: 4, kind: input, shape index: {}]   ;;  %s1365_s5 = inlined_call_operand.vmem [shape: bf16[32,8], index: 5, kind: input, shape index: {}]   ;;  %s1366_s6 = inlined_call_operand.vmem [shape: f32[1,8], index: 6, kind: input, shape index: {}]   ;;  %s1367_s7 = inlined_call_operand.hbm [shape: f32[8,256], index: 7, kind: output, shape index: {}]  }
   0x1   :  { %14 = vsyncpa [#allocation3 + $0x1], 0  ;;  %s1213_s24 = smov 0   ;;  %s1215_s25 = smov 0  }
   0x2   :  { %s1217_s26 = smov 0   ;;  %s1219_s27 = smov 0  }
   0x3 LB: > { %s1234_s28 = sadd.s32 4294967295, %s1170_s27   ;;  %s916_s29 = sadd.s32 4294967294, %s1170_s27   ;;  %s1170_s27 = sphi %s1219_s27, %s1373_s27   ;;  %s1166_s26 = sphi %s1217_s26, %s1372_s26   ;;  %s1162_s25 = sphi %s1215_s25, %s1371_s25   ;;  %s1158_s24 = sphi %s1213_s24, %s1370_s24  }
   0x4   : > { %s1238_s30 = sadd.s32 1, %s1170_s27   ;;  %s179_s8 = sadd.s32 1, %s1166_s26 }
   0x5   : > { %s176_s9 = ssub.s32 %s1170_s27, %s1238_s30  ;;  %p189_p0 = scmp.ne.s32.totalorder %s1166_s26, %s1162_s25 }
   0x6   : > { %p177_p1 = scmp.eq.s32.totalorder %s176_s9, 0  ;;  %p190_p2 = scmp.eq.s32.totalorder %s1234_s28, 1 }
   0x7   : > { %p195_p3 = scmp.ne.s32.totalorder %s1162_s25, %s1158_s24  ;;  %p196_p4 = scmp.eq.s32.totalorder %s916_s29, 1 }
   0x8   : > { %s1249_s10 = scalar_select %p177_p1, %s1166_s26, %s179_s8  }
   0x9   : > { %p1251_p5 = por %p190_p2, %p189_p0  ;;  %p1255_p6 = por %p196_p4, %p195_p3 }
   0xa   : > { %p919_p7 = scmp.ge.s32.totalorder %s1170_s27, 1  ;;  %p241_p8 = scmp.lt.s32.totalorder %s1170_s27, 3 }
   0xc   : > { %p242_p9 = pnand %p919_p7, %p241_p8 }
   0xd   : > { %v1095_v0 = vld [vmem:[%s1361_s1] sm:$0xff] (!%p242_p9)   ;;  %s921_s15 = sshll.u32 (!%p242_p9), %s1234_s28, 4  ;;  %vm351_vm0 = vcmask (!%p242_p9), 130048   ;;  %v1105_v10 = vld [vmem:[%s1363_s3 + $0x8] sm:$0xff] (!%p242_p9)   ;;  %vm520_vm1 = vcmask (!%p242_p9), 261120   ;;  %s270_s20 = sand.u32 (!%p242_p9), 1, %s1162_s25  }
   0xe   : > { %245 = sbr.rel (%p242_p9) target bundleno = 828 (0x33c), region = 48  ;;  %p274_p10 = scmp.lt.s32.totalorder (!%p242_p9), %s921_s15, 31  ;;  %996 = vmatprep.subr.bf16.mxu0 (!%p242_p9), %v1095_v0  ;;  %1054 = vmatprep.subr.bf16.mxu1 (!%p242_p9), %v1095_v0  ;;  %v1104_v1 = vld [vmem:[%s1363_s3] sm:$0xff] (!%p242_p9)  }
   0xf   : > { %997 = vmatpush3.bf16.msra.mxu0 (!%p242_p9), %v1095_v0  ;;  %1055 = vmatpush3.bf16.msra.mxu1 (!%p242_p9), %v1095_v0  ;;  %v1106_v11 = vld [vmem:[%s1365_s5] sm:$0xff] (!%p242_p9)   ;;  %s964_s29 = sshll.u32 (!%p242_p9), %s1234_s28, 7  ;;  %s844_s14 = scalar_lea.sflag (!%p242_p9), [#allocation3], %s270_s20 }
  0x10   : > { %1014 = vmatprep.subr.bf16.mxu1 (!%p242_p9), %v1104_v1  ;;  %1034 = vmatprep.subr.bf16.mxu0 (!%p242_p9), %v1106_v11  ;;  %v923_v12 = vld [vmem:[%s1362_s2] ss:$0 sm:$0xff] (!%p242_p9)  ;;  %s1320_s13 = scalar_lea.hbm (!%p242_p9), %s1367_s7, %s964_s29  ;;  %s1172_s16 = smov (!%p242_p9), [#allocation2]  }
  0x11   : > { %s1112_s28 = sshll.u32 (!%p242_p9), %s1172_s16, 4  ;;  %s1113_s28 = int_to_ptr.vmem [resolvable:$false] %s1112_s28 }
  0x12   : > { %s1114_s17 = scalar_lea.vmem (!%p242_p9), %s1113_s28, 256 }
  0x15   : > { %s1375_s15 = smov (!%p274_p10, %s921_s15), 31 }
  0x16   : > { %s922_s18 = sshll.u32 %s1375_s15, 2 }
  0x17   : > { %s277_s21 = scalar_lea.vmem %s1360_s0, %s922_s18 }
  0x18   : > { %v1096_v2 = vld [vmem:[%s277_s21] sm:$0xff]   ;;  %v1097_v3 = vld [vmem:[%s277_s21 + $0x8] sm:$0xff]   ;;  %v1098_v4 = vld [vmem:[%s277_s21 + $0x10] sm:$0xff]  }
  0x19   : > { %998 = vmatprep.mubr.msk.bf16.mxu0 %vm351_vm0, %v1096_v2  ;;  %v1100_v5 = vld [vmem:[%s277_s21 + $0x20] sm:$0xff]   ;;  %v1101_v6 = vld [vmem:[%s277_s21 + $0x28] sm:$0xff]   ;;  %v1102_v7 = vld [vmem:[%s277_s21 + $0x30] sm:$0xff]  }
  0x1a   : > { %999 = vmatmul.mubr.msk.bf16.vlgmr.msra.gmra.mrb[0].mxu0 %vm351_vm0, %v1097_v3  ;;  %1006 = vmatprep.mubr.msk.bf16.mxu1 %vm351_vm0, %v1100_v5  ;;  %v1099_v8 = vld [vmem:[%s277_s21 + $0x18] sm:$0xff]   ;;  %v1107_v5 = vld [vmem:[%s1365_s5 + $0x8] sm:$0xff]  }
  0x1b   : > { %1002 = vmatprep.mubr.msk.bf16.mxu0 %vm351_vm0, %v1098_v4  ;;  %1007 = vmatmul.mubr.msk.bf16.vlgmr.msra.gmra.mrb[0].mxu1 %vm351_vm0, %v1101_v6  ;;  %v1103_v9 = vld [vmem:[%s277_s21 + $0x38] sm:$0xff]   ;;  %v941_v6 = vld [vmem:[%s1364_s4] ss:$0 sm:$0xff]  ;;  %s920_s21 = sshll.u32 %s270_s20, 3 }
  0x1c   : > { %1010 = vmatprep.mubr.msk.bf16.mxu1 %vm351_vm0, %v1102_v7  ;;  %1015 = vmatpush3.bf16.msra.mxu1 %v1104_v1  ;;  %s272_s22 = scalar_lea.vmem [#allocation2], %s920_s21 }
  0x1d   : > { %1016 = vmatprep.subr.bf16.mxu1 %v1105_v10  ;;  %1035 = vmatpush3.bf16.msra.mxu0 %v1106_v11  ;;  %s857_s23 = sshll.u32 %s272_s22, 4  ;;  %s1315_s23 = int_to_ptr.vmem [resolvable:$true] %s857_s23 }
  0x1e   : > { %1036 = vmatprep.subr.bf16.mxu0 %v1107_v5  ;;  %s1108_s15 = scalar_lea.vmem %s1315_s23, 128  ;;  %p1115_p0 = scmp.lt.s32.totalorder %s1315_s23, %s1113_s28 }
  0x1f   : > { %p1109_p11 = scmp.ne.s32.totalorder %s1315_s23, %s1108_s15  ;;  %p1116_p1 = scmp.lt.s32.totalorder %s1114_s17, %s1108_s15 }
  0x20   : > { %1017 = vmatpush3.bf16.msra.mxu1 %v1105_v10 }
  0x21   : > { %1037 = vmatpush3.bf16.msra.mxu0 %v1107_v5  ;;  %p1110_p12 = pnand %p1109_p11, %p1251_p5  ;;  %p1117_p2 = por %p1116_p1, %p1115_p0 }
  0x22   : > { %1003 = vmatmul.mubr.msk.bf16.gmra.mrb[4].mxu0 %vm351_vm0, %v1099_v8 }
  0x23   : > { %1011 = vmatmul.mubr.msk.bf16.gmra.mrb[4].mxu1 %vm351_vm0, %v1103_v9  ;;  %p1111_p13 = pneg %p1110_p12 }
  0x25   : > { %p1118_p3 = pnand %p1117_p2, %p1111_p13 }
  0xed   : > { %v1000_v13 = vpop.f32.mrb[0].mxu0 }
  0xee   : > { %v419_v14 = vadd.f32 %v1000_v13, %v923_v12  ;;  %v410_v15 = vpop.f32.mrb[1].mxu0  ;;  %v1008_v21 = vpop.f32.mrb[0].mxu1 }
  0xef   : > { %v411_v16 = vadd.f32 %v923_v12, %v410_v15  ;;  %v1001_v17 = vpop.f32.mrb[2].mxu0  ;;  %v451_v24 = vadd.f32 %v1008_v21, %v923_v12  ;;  %v442_v25 = vpop.f32.mrb[1].mxu1 }
  0xf0   : > { %v422_v18 = vadd.f32 %v1001_v17, %v923_v12  ;;  %v413_v19 = vpop.f32.mrb[3].mxu0  ;;  %v475_v22 = vmax.f32 %v419_v14, 0.0  ;;  %v443_v28 = vadd.f32 %v923_v12, %v442_v25  ;;  %v1009_v29 = vpop.f32.mrb[2].mxu1 }
  0xf1   : > { %v414_v20 = vadd.f32 %v923_v12, %v413_v19  ;;  %v473_v26 = vmax.f32 %v411_v16, 0.0  ;;  %v483_v31 = vmax.f32 %v451_v24, 0.0  ;;  %v454_v32 = vadd.f32 %v1009_v29, %v923_v12  ;;  %v445_v33 = vpop.f32.mrb[3].mxu1 }
  0xf2   : > { %v476_v23 = vmax.f32 %v422_v18, 0.0  ;;  %v481_v36 = vmax.f32 %v443_v28, 0.0  ;;  %v446_v37 = vadd.f32 %v923_v12, %v445_v33 }
  0xf3   : > { %v474_v27 = vmax.f32 %v414_v20, 0.0  ;;  %v484_v40 = vmax.f32 %v454_v32, 0.0 }
  0xf4   : > { %v490_v30 = vpack.c.bf16 %v476_v23, %v475_v22  ;;  %v482_v43 = vmax.f32 %v446_v37, 0.0 }
  0xf5   : > { %v489_v34 = vpack.c.bf16 %v474_v27, %v473_v26  ;;  %v1004_v35 = vpop.f32.mrb[4].mxu0  ;;  %v494_v47 = vpack.c.bf16 %v484_v40, %v483_v31 }
  0xf6   : > { %v435_v38 = vadd.f32 %v1004_v35, %v923_v12  ;;  %v426_v39 = vpop.f32.mrb[5].mxu0  ;;  %v493_v50 = vpack.c.bf16 %v482_v43, %v481_v36  ;;  %v1012_v51 = vpop.f32.mrb[4].mxu1 }
  0xf7   : > { %v427_v41 = vadd.f32 %v923_v12, %v426_v39  ;;  %v1005_v42 = vpop.f32.mrb[6].mxu0  ;;  %1018 = vmatprep.mubr.msk.bf16.mxu1 %vm520_vm1, %v489_v34  ;;  %v467_v53 = vadd.f32 %v1012_v51, %v923_v12  ;;  %v458_v54 = vpop.f32.mrb[5].mxu1 }
  0xf8   : > { %v479_v44 = vmax.f32 %v435_v38, 0.0  ;;  %v438_v45 = vadd.f32 %v1005_v42, %v923_v12  ;;  %v429_v46 = vpop.f32.mrb[7].mxu0  ;;  %1019 = vmatmul.mubr.msk.bf16.vlgmr.msra.gmra.mrb[8].mxu1 %vm520_vm1, %v490_v30  ;;  %v459_v56 = vadd.f32 %v923_v12, %v458_v54  ;;  %v1013_v57 = vpop.f32.mrb[6].mxu1 }
  0xf9   : > { %v477_v48 = vmax.f32 %v427_v41, 0.0  ;;  %v430_v49 = vadd.f32 %v923_v12, %v429_v46  ;;  %v487_v59 = vmax.f32 %v467_v53, 0.0  ;;  %v470_v60 = vadd.f32 %v1013_v57, %v923_v12  ;;  %v461_v61 = vpop.f32.mrb[7].mxu1 }
  0xfa   : > { %v480_v52 = vmax.f32 %v438_v45, 0.0  ;;  %v485_v63 = vmax.f32 %v459_v56, 0.0  ;;  %v462_v0 = vadd.f32 %v923_v12, %v461_v61 }
  0xfb   : > { %v478_v55 = vmax.f32 %v430_v49, 0.0  ;;  %v488_v1 = vmax.f32 %v470_v60, 0.0 }
  0xfc   : > { %v492_v58 = vpack.c.bf16 %v480_v52, %v479_v44  ;;  %v486_v2 = vmax.f32 %v462_v0, 0.0 }
  0xfd   : > { %v491_v62 = vpack.c.bf16 %v478_v55, %v477_v48  ;;  %v496_v3 = vpack.c.bf16 %v488_v1, %v487_v59 }
  0xfe   : > { %v495_v4 = vpack.c.bf16 %v486_v2, %v485_v63  ;;  %v952_v63 = vld [vmem:[%s1366_s6] ss:$0 sm:$0xff] }
  0xff   : > { %1022 = vmatprep.mubr.msk.bf16.mxu1 %vm520_vm1, %v491_v62 }
 0x100   : > { %1023 = vmatmul.mubr.msk.bf16.gmra.mrb[12].mxu1 %vm520_vm1, %v492_v58 }
 0x101   : > { %1026 = vmatprep.mubr.msk.bf16.mxu1 %vm520_vm1, %v493_v50 }
 0x108   : > { %1027 = vmatmul.mubr.msk.bf16.gmra.mrb[16].mxu1 %vm520_vm1, %v494_v47 }
 0x109   : > { %1030 = vmatprep.mubr.msk.bf16.mxu1 %vm520_vm1, %v495_v4 }
 0x110   : > { %1031 = vmatmul.mubr.msk.bf16.gmra.mrb[20].mxu1 %vm520_vm1, %v496_v3 }
 0x1cb   : > { %v1020_v7 = vpop.f32.mrb[8].mxu1 }
 0x1cc   : > { %v588_v8 = vadd.f32 %v1020_v7, %v941_v6  ;;  %v579_v9 = vpop.f32.mrb[9].mxu1 }
 0x1cd   : > { %v580_v10 = vadd.f32 %v941_v6, %v579_v9  ;;  %v1021_v11 = vpop.f32.mrb[10].mxu1 }
 0x1ce   : > { %v591_v12 = vadd.f32 %v1021_v11, %v941_v6  ;;  %v582_v13 = vpop.f32.mrb[11].mxu1  ;;  %v644_v15 = vmax.f32 %v588_v8, 0.0 }
 0x1cf   : > { %v583_v14 = vadd.f32 %v941_v6, %v582_v13  ;;  %v642_v17 = vmax.f32 %v580_v10, 0.0 }
 0x1d0   : > { %v645_v16 = vmax.f32 %v591_v12, 0.0 }
 0x1d1   : > { %v643_v18 = vmax.f32 %v583_v14, 0.0 }
 0x1d2   : > { %v659_v19 = vpack.c.bf16 %v645_v16, %v644_v15 }
 0x1d3   : > { %v658_v20 = vpack.c.bf16 %v643_v18, %v642_v17  ;;  %v1024_v21 = vpop.f32.mrb[12].mxu1 }
 0x1d4   : > { %v604_v22 = vadd.f32 %v1024_v21, %v941_v6  ;;  %v595_v23 = vpop.f32.mrb[13].mxu1 }
 0x1d5   : > { %v596_v24 = vadd.f32 %v941_v6, %v595_v23  ;;  %v1025_v25 = vpop.f32.mrb[14].mxu1  ;;  %1038 = vmatprep.mubr.msk.bf16.mxu0 %vm520_vm1, %v658_v20 }
 0x1d6   : > { %v648_v26 = vmax.f32 %v604_v22, 0.0  ;;  %v607_v27 = vadd.f32 %v1025_v25, %v941_v6  ;;  %v598_v28 = vpop.f32.mrb[15].mxu1  ;;  %1039 = vmatmul.mubr.msk.bf16.vlgmr.msra.gmra.mrb[8].mxu0 %vm520_vm1, %v659_v19 }
 0x1d7   : > { %v646_v29 = vmax.f32 %v596_v24, 0.0  ;;  %v599_v30 = vadd.f32 %v941_v6, %v598_v28 }
 0x1d8   : > { %v649_v31 = vmax.f32 %v607_v27, 0.0 }
 0x1d9   : > { %v647_v32 = vmax.f32 %v599_v30, 0.0 }
 0x1da   : > { %v661_v33 = vpack.c.bf16 %v649_v31, %v648_v26 }
 0x1db   : > { %v660_v34 = vpack.c.bf16 %v647_v32, %v646_v29  ;;  %v1028_v35 = vpop.f32.mrb[16].mxu1 }
 0x1dc   : > { %v620_v36 = vadd.f32 %v1028_v35, %v941_v6  ;;  %v611_v37 = vpop.f32.mrb[17].mxu1 }
 0x1dd   : > { %1042 = vmatprep.mubr.msk.bf16.mxu0 %vm520_vm1, %v660_v34  ;;  %v612_v38 = vadd.f32 %v941_v6, %v611_v37  ;;  %v1029_v39 = vpop.f32.mrb[18].mxu1 }
 0x1de   : > { %1043 = vmatmul.mubr.msk.bf16.gmra.mrb[12].mxu0 %vm520_vm1, %v661_v33  ;;  %v652_v40 = vmax.f32 %v620_v36, 0.0  ;;  %v623_v41 = vadd.f32 %v1029_v39, %v941_v6  ;;  %v614_v42 = vpop.f32.mrb[19].mxu1 }
 0x1df   : > { %v650_v43 = vmax.f32 %v612_v38, 0.0  ;;  %v615_v44 = vadd.f32 %v941_v6, %v614_v42 }
 0x1e0   : > { %v653_v45 = vmax.f32 %v623_v41, 0.0 }
 0x1e1   : > { %v651_v46 = vmax.f32 %v615_v44, 0.0 }
 0x1e2   : > { %v663_v47 = vpack.c.bf16 %v653_v45, %v652_v40 }
 0x1e3   : > { %v662_v48 = vpack.c.bf16 %v651_v46, %v650_v43  ;;  %v1032_v49 = vpop.f32.mrb[20].mxu1 }
 0x1e4   : > { %v636_v50 = vadd.f32 %v1032_v49, %v941_v6  ;;  %v627_v51 = vpop.f32.mrb[21].mxu1 }
 0x1e5   : > { %1046 = vmatprep.mubr.msk.bf16.mxu0 %vm520_vm1, %v662_v48  ;;  %v628_v52 = vadd.f32 %v941_v6, %v627_v51  ;;  %v1033_v53 = vpop.f32.mrb[22].mxu1 }
 0x1e6   : > { %1047 = vmatmul.mubr.msk.bf16.gmra.mrb[16].mxu0 %vm520_vm1, %v663_v47  ;;  %v656_v54 = vmax.f32 %v636_v50, 0.0  ;;  %v639_v55 = vadd.f32 %v1033_v53, %v941_v6  ;;  %v630_v56 = vpop.f32.mrb[23].mxu1 }
 0x1e7   : > { %v654_v57 = vmax.f32 %v628_v52, 0.0  ;;  %v631_v58 = vadd.f32 %v941_v6, %v630_v56 }
 0x1e8   : > { %v657_v59 = vmax.f32 %v639_v55, 0.0 }
 0x1e9   : > { %v655_v60 = vmax.f32 %v631_v58, 0.0 }
 0x1ea   : > { %v665_v61 = vpack.c.bf16 %v657_v59, %v656_v54 }
 0x1eb   : > { %v664_v62 = vpack.c.bf16 %v655_v60, %v654_v57 }
 0x1ed   : > { %1050 = vmatprep.mubr.msk.bf16.mxu0 %vm520_vm1, %v664_v62 }
 0x1ee   : > { %1051 = vmatmul.mubr.msk.bf16.gmra.mrb[20].mxu0 %vm520_vm1, %v665_v61 }
 0x2a9   : > { %v1040_v0 = vpop.f32.mrb[8].mxu0 }
 0x2aa   : > { %v747_v1 = vpop.f32.mrb[9].mxu0  ;;  %v756_v8 = vadd.f32 %v1040_v0, %v952_v63 }
 0x2ab   : > { %v1041_v2 = vpop.f32.mrb[10].mxu0  ;;  %v748_v3 = vadd.f32 %v952_v63, %v747_v1 }
 0x2ac   : > { %v750_v4 = vpop.f32.mrb[11].mxu0  ;;  %v759_v11 = vadd.f32 %v1041_v2, %v952_v63 }
 0x2ad   : > { %810 = vxpose.xlu0.b32.start [1/16] (narrow) %v748_v3, 8  ;;  %v751_v5 = vadd.f32 %v952_v63, %v750_v4 }
 0x2b1   : > { %v1044_v6 = vpop.f32.mrb[12].mxu0  ;;  %811 = vxpose.xlu0.b32.cont [2/16] (narrow) %v751_v5, 8 }
 0x2b2   : > { %v763_v7 = vpop.f32.mrb[13].mxu0  ;;  %v772_v20 = vadd.f32 %v1044_v6, %v952_v63 }
 0x2b3   : > { %v1045_v9 = vpop.f32.mrb[14].mxu0  ;;  %v764_v14 = vadd.f32 %v952_v63, %v763_v7 }
 0x2b4   : > { %v766_v10 = vpop.f32.mrb[15].mxu0  ;;  %v775_v23 = vadd.f32 %v1045_v9, %v952_v63 }
 0x2b5   : > { %812 = vxpose.xlu0.b32.cont [3/16] (narrow) %v756_v8, 8  ;;  %v767_v17 = vadd.f32 %v952_v63, %v766_v10 }
 0x2b9   : > { %813 = vxpose.xlu0.b32.cont [4/16] (narrow) %v759_v11, 8  ;;  %v1048_v12 = vpop.f32.mrb[16].mxu0 }
 0x2ba   : > { %v779_v13 = vpop.f32.mrb[17].mxu0  ;;  %v788_v26 = vadd.f32 %v1048_v12, %v952_v63 }
 0x2bb   : > { %v1049_v15 = vpop.f32.mrb[18].mxu0  ;;  %v780_v24 = vadd.f32 %v952_v63, %v779_v13 }
 0x2bc   : > { %v782_v16 = vpop.f32.mrb[19].mxu0  ;;  %v791_v27 = vadd.f32 %v1049_v15, %v952_v63 }
 0x2bd   : > { %814 = vxpose.xlu0.b32.cont [5/16] (narrow) %v764_v14, 8  ;;  %v783_v25 = vadd.f32 %v952_v63, %v782_v16 }
 0x2c1   : > { %815 = vxpose.xlu0.b32.cont [6/16] (narrow) %v767_v17, 8  ;;  %v1052_v18 = vpop.f32.mrb[20].mxu0 }
 0x2c2   : > { %v795_v19 = vpop.f32.mrb[21].mxu0  ;;  %v804_v30 = vadd.f32 %v1052_v18, %v952_v63 }
 0x2c3   : > { %v1053_v21 = vpop.f32.mrb[22].mxu0  ;;  %v796_v28 = vadd.f32 %v952_v63, %v795_v19 }
 0x2c4   : > { %v798_v22 = vpop.f32.mrb[23].mxu0  ;;  %v807_v31 = vadd.f32 %v1053_v21, %v952_v63 }
 0x2c5   : > { %816 = vxpose.xlu0.b32.cont [7/16] (narrow) %v772_v20, 8  ;;  %v799_v29 = vadd.f32 %v952_v63, %v798_v22 }
 0x2c9   : > { %817 = vxpose.xlu0.b32.cont [8/16] (narrow) %v775_v23, 8 }
 0x2cd   : > { %818 = vxpose.xlu0.b32.cont [9/16] (narrow) %v780_v24, 8 }
 0x2d1   : > { %819 = vxpose.xlu0.b32.cont [10/16] (narrow) %v783_v25, 8 }
 0x2d5   : > { %820 = vxpose.xlu0.b32.cont [11/16] (narrow) %v788_v26, 8 }
 0x2d9   : > { %821 = vxpose.xlu0.b32.cont [12/16] (narrow) %v791_v27, 8 }
 0x2dd   : > { %822 = vxpose.xlu0.b32.cont [13/16] (narrow) %v796_v28, 8 }
 0x2e1   : > { %823 = vxpose.xlu0.b32.cont [14/16] (narrow) %v799_v29, 8 }
 0x2e5   : > { %824 = vxpose.xlu0.b32.cont [15/16] (narrow) %v804_v30, 8 }
 0x2e9   : > { %825 = vxpose.xlu0.b32.end [16/16] (narrow) %v807_v31, 8 }
 0x32d   : > { %v826_v32 = vpop.trf.xlu0 }
 0x32e   : > { %842 = vst [vmem:[%s272_s22] sm:$0xff] %v826_v32 }
 0x32f   : > { %1121 = shalt.err (!%p1118_p3)
}
 0x330   : > { %s1122_s18 = scalar_lea.hbm %s1320_s13, 128  ;;  %s1126_s21 = scalar_lea.hbm %s1367_s7, 256 }
 0x331   : > { %p1123_p4 = scmp.ne.s32.totalorder %s1320_s13, %s1122_s18  ;;  %p1127_p9 = scmp.lt.u32.totalorder %s1320_s13, %s1367_s7 }
 0x332   : > { %p1128_p10 = scmp.lt.u32.totalorder %s1126_s21, %s1122_s18  ;;  %p1130_p12 = scmp.lt.u32.totalorder %s1122_s18, %s1320_s13 }
 0x333   : > { %p1124_p7 = pnand %p1123_p4, %p1251_p5 }
 0x334   : > { %p1129_p11 = por %p1128_p10, %p1127_p9 }
 0x335   : > { %p1125_p8 = pneg %p1124_p7 }
 0x336   : > { %p1131_p13 = por %p1130_p12, %p1129_p11 }
 0x338   : > { %p1132_p0 = pnand %p1131_p13, %p1125_p8 }
 0x33a   : > { %1135 = shalt.err (!%p1132_p0)
}
 0x33b   : > { %1056 = dma.vmem_to_hbm [thread:$0]  (%p1251_p5), %s1315_s23, 128, %s1320_s13, %s844_s14  }
 0x33c PF: > { %p1062_p1 = scmp.ge.s32.totalorder %s1170_s27, 2  ;;  %s869_s8 = sand.u32 1, %s1158_s24  }
 0x33d   : > { %s870_s9 = scalar_lea.sflag [#allocation3], %s869_s8 }
 0x33e   : > { %p1059_p2 = pnand %p1062_p1, %p1255_p6 }
 0x340   : > { %1153 = dma.done.wait (!%p1059_p2), %s870_s9, 128  }
 0x341   : > { %1155 = vsyncadd (!%p1059_p2), %s870_s9, 4294967168  ;;  %p17_p3 = scmp.ge.s32.totalorder %s1238_s30, 4   ;;  %s1370_s24 = smov %s1162_s25 }
 0x342   : > { %s1371_s25 = smov %s1166_s26  ;;  %s1372_s26 = smov %s1249_s10 }
 0x343   : > { %s1373_s27 = smov %s1238_s30  ;;  %19 = sbr.rel (!%p17_p3) target bundleno = 3 (0x3), region = 83 }
 0x34a   :  { %875 = vsyncpa [#allocation3], 1 }
 0x34b   :  { %877 = vsyncpa [#allocation3 + $0x1], 1 }

// kernel: tpu_custom_call.1
= control target key start
LH: loop header
LB: loop body
LE: loop exit
PB: predicated region body
PF: predicated region fallthrough
CT: control target
= control target key end

     0   :  { %12 = vsyncpa [#allocation3], 0  ;;  %s1360_s0 = inlined_call_operand.vmem [shape: bf16[256,16], index: 0, kind: input, shape index: {}]   ;;  %s1361_s1 = inlined_call_operand.vmem [shape: bf16[16,32], index: 1, kind: input, shape index: {}]   ;;  %s1362_s2 = inlined_call_operand.vmem [shape: f32[1,32], index: 2, kind: input, shape index: {}]   ;;  %s1363_s3 = inlined_call_operand.vmem [shape: bf16[32,32], index: 3, kind: input, shape index: {}]   ;;  %s1364_s4 = inlined_call_operand.vmem [shape: f32[1,32], index: 4, kind: input, shape index: {}]   ;;  %s1365_s5 = inlined_call_operand.vmem [shape: bf16[32,8], index: 5, kind: input, shape index: {}]   ;;  %s1366_s6 = inlined_call_operand.vmem [shape: f32[1,8], index: 6, kind: input, shape index: {}]   ;;  %s1367_s7 = inlined_call_operand.hbm [shape: f32[8,256], index: 7, kind: output, shape index: {}]  }
   0x1   :  { %14 = vsyncpa [#allocation3 + $0x1], 0  ;;  %s1213_s24 = smov 0   ;;  %s1215_s25 = smov 0  }
   0x2   :  { %s1217_s26 = smov 0   ;;  %s1219_s27 = smov 0  }
   0x3 LB: > { %s1234_s28 = sadd.s32 4294967295, %s1170_s27   ;;  %s916_s29 = sadd.s32 4294967294, %s1170_s27   ;;  %s1170_s27 = sphi %s1219_s27, %s1373_s27   ;;  %s1166_s26 = sphi %s1217_s26, %s1372_s26   ;;  %s1162_s25 = sphi %s1215_s25, %s1371_s25   ;;  %s1158_s24 = sphi %s1213_s24, %s1370_s24  }
   0x4   : > { %s1238_s30 = sadd.s32 1, %s1170_s27   ;;  %s179_s8 = sadd.s32 1, %s1166_s26 }
   0x5   : > { %s176_s9 = ssub.s32 %s1170_s27, %s1238_s30  ;;  %p189_p0 = scmp.ne.s32.totalorder %s1166_s26, %s1162_s25 }
   0x6   : > { %p177_p1 = scmp.eq.s32.totalorder %s176_s9, 0  ;;  %p190_p2 = scmp.eq.s32.totalorder %s1234_s28, 1 }
   0x7   : > { %p195_p3 = scmp.ne.s32.totalorder %s1162_s25, %s1158_s24  ;;  %p196_p4 = scmp.eq.s32.totalorder %s916_s29, 1 }
   0x8   : > { %s1249_s10 = scalar_select %p177_p1, %s1166_s26, %s179_s8  }
   0x9   : > { %p1251_p5 = por %p190_p2, %p189_p0  ;;  %p1255_p6 = por %p196_p4, %p195_p3 }
   0xa   : > { %p919_p7 = scmp.ge.s32.totalorder %s1170_s27, 1  ;;  %p241_p8 = scmp.lt.s32.totalorder %s1170_s27, 3 }
   0xc   : > { %p242_p9 = pnand %p919_p7, %p241_p8 }
   0xd   : > { %v1095_v0 = vld [vmem:[%s1361_s1] sm:$0xff] (!%p242_p9)   ;;  %s921_s15 = sshll.u32 (!%p242_p9), %s1234_s28, 4  ;;  %vm351_vm0 = vcmask (!%p242_p9), 130048   ;;  %v1105_v10 = vld [vmem:[%s1363_s3 + $0x8] sm:$0xff] (!%p242_p9)   ;;  %vm520_vm1 = vcmask (!%p242_p9), 261120   ;;  %s270_s20 = sand.u32 (!%p242_p9), 1, %s1162_s25  }
   0xe   : > { %245 = sbr.rel (%p242_p9) target bundleno = 828 (0x33c), region = 48  ;;  %p274_p10 = scmp.lt.s32.totalorder (!%p242_p9), %s921_s15, 31  ;;  %996 = vmatprep.subr.bf16.mxu0 (!%p242_p9), %v1095_v0  ;;  %1054 = vmatprep.subr.bf16.mxu1 (!%p242_p9), %v1095_v0  ;;  %v1104_v1 = vld [vmem:[%s1363_s3] sm:$0xff] (!%p242_p9)  }
   0xf   : > { %997 = vmatpush3.bf16.msra.mxu0 (!%p242_p9), %v1095_v0  ;;  %1055 = vmatpush3.bf16.msra.mxu1 (!%p242_p9), %v1095_v0  ;;  %v1106_v11 = vld [vmem:[%s1365_s5] sm:$0xff] (!%p242_p9)   ;;  %s964_s29 = sshll.u32 (!%p242_p9), %s1234_s28, 7  ;;  %s844_s14 = scalar_lea.sflag (!%p242_p9), [#allocation3], %s270_s20 }
  0x10   : > { %1014 = vmatprep.subr.bf16.mxu1 (!%p242_p9), %v1104_v1  ;;  %1034 = vmatprep.subr.bf16.mxu0 (!%p242_p9), %v1106_v11  ;;  %v923_v12 = vld [vmem:[%s1362_s2] ss:$0 sm:$0xff] (!%p242_p9)  ;;  %s1320_s13 = scalar_lea.hbm (!%p242_p9), %s1367_s7, %s964_s29  ;;  %s1172_s16 = smov (!%p242_p9), [#allocation2]  }
  0x11   : > { %s1112_s28 = sshll.u32 (!%p242_p9), %s1172_s16, 4  ;;  %s1113_s28 = int_to_ptr.vmem [resolvable:$false] %s1112_s28 }
  0x12   : > { %s1114_s17 = scalar_lea.vmem (!%p242_p9), %s1113_s28, 256 }
  0x15   : > { %s1375_s15 = smov (!%p274_p10, %s921_s15), 31 }
  0x16   : > { %s922_s18 = sshll.u32 %s1375_s15, 2 }
  0x17   : > { %s277_s21 = scalar_lea.vmem %s1360_s0, %s922_s18 }
  0x18   : > { %v1096_v2 = vld [vmem:[%s277_s21] sm:$0xff]   ;;  %v1097_v3 = vld [vmem:[%s277_s21 + $0x8] sm:$0xff]   ;;  %v1098_v4 = vld [vmem:[%s277_s21 + $0x10] sm:$0xff]  }
  0x19   : > { %998 = vmatprep.mubr.msk.bf16.mxu0 %vm351_vm0, %v1096_v2  ;;  %v1100_v5 = vld [vmem:[%s277_s21 + $0x20] sm:$0xff]   ;;  %v1101_v6 = vld [vmem:[%s277_s21 + $0x28] sm:$0xff]   ;;  %v1102_v7 = vld [vmem:[%s277_s21 + $0x30] sm:$0xff]  }
  0x1a   : > { %999 = vmatmul.mubr.msk.bf16.vlgmr.msra.gmra.mrb[0].mxu0 %vm351_vm0, %v1097_v3  ;;  %1006 = vmatprep.mubr.msk.bf16.mxu1 %vm351_vm0, %v1100_v5  ;;  %v1099_v8 = vld [vmem:[%s277_s21 + $0x18] sm:$0xff]   ;;  %v1107_v5 = vld [vmem:[%s1365_s5 + $0x8] sm:$0xff]  }
  0x1b   : > { %1002 = vmatprep.mubr.msk.bf16.mxu0 %vm351_vm0, %v1098_v4  ;;  %1007 = vmatmul.mubr.msk.bf16.vlgmr.msra.gmra.mrb[0].mxu1 %vm351_vm0, %v1101_v6  ;;  %v1103_v9 = vld [vmem:[%s277_s21 + $0x38] sm:$0xff]   ;;  %v941_v6 = vld [vmem:[%s1364_s4] ss:$0 sm:$0xff]  ;;  %s920_s21 = sshll.u32 %s270_s20, 3 }
  0x1c   : > { %1010 = vmatprep.mubr.msk.bf16.mxu1 %vm351_vm0, %v1102_v7  ;;  %1015 = vmatpush3.bf16.msra.mxu1 %v1104_v1  ;;  %s272_s22 = scalar_lea.vmem [#allocation2], %s920_s21 }
  0x1d   : > { %1016 = vmatprep.subr.bf16.mxu1 %v1105_v10  ;;  %1035 = vmatpush3.bf16.msra.mxu0 %v1106_v11  ;;  %s857_s23 = sshll.u32 %s272_s22, 4  ;;  %s1315_s23 = int_to_ptr.vmem [resolvable:$true] %s857_s23 }
  0x1e   : > { %1036 = vmatprep.subr.bf16.mxu0 %v1107_v5  ;;  %s1108_s15 = scalar_lea.vmem %s1315_s23, 128  ;;  %p1115_p0 = scmp.lt.s32.totalorder %s1315_s23, %s1113_s28 }
  0x1f   : > { %p1109_p11 = scmp.ne.s32.totalorder %s1315_s23, %s1108_s15  ;;  %p1116_p1 = scmp.lt.s32.totalorder %s1114_s17, %s1108_s15 }
  0x20   : > { %1017 = vmatpush3.bf16.msra.mxu1 %v1105_v10 }
  0x21   : > { %1037 = vmatpush3.bf16.msra.mxu0 %v1107_v5  ;;  %p1110_p12 = pnand %p1109_p11, %p1251_p5  ;;  %p1117_p2 = por %p1116_p1, %p1115_p0 }
  0x22   : > { %1003 = vmatmul.mubr.msk.bf16.gmra.mrb[4].mxu0 %vm351_vm0, %v1099_v8 }
  0x23   : > { %1011 = vmatmul.mubr.msk.bf16.gmra.mrb[4].mxu1 %vm351_vm0, %v1103_v9  ;;  %p1111_p13 = pneg %p1110_p12 }
  0x25   : > { %p1118_p3 = pnand %p1117_p2, %p1111_p13 }
  0xed   : > { %v1000_v13 = vpop.f32.mrb[0].mxu0 }
  0xee   : > { %v419_v14 = vadd.f32 %v1000_v13, %v923_v12  ;;  %v410_v15 = vpop.f32.mrb[1].mxu0  ;;  %v1008_v21 = vpop.f32.mrb[0].mxu1 }
  0xef   : > { %v411_v16 = vadd.f32 %v923_v12, %v410_v15  ;;  %v1001_v17 = vpop.f32.mrb[2].mxu0  ;;  %v451_v24 = vadd.f32 %v1008_v21, %v923_v12  ;;  %v442_v25 = vpop.f32.mrb[1].mxu1 }
  0xf0   : > { %v422_v18 = vadd.f32 %v1001_v17, %v923_v12  ;;  %v413_v19 = vpop.f32.mrb[3].mxu0  ;;  %v475_v22 = vmax.f32 %v419_v14, 0.0  ;;  %v443_v28 = vadd.f32 %v923_v12, %v442_v25  ;;  %v1009_v29 = vpop.f32.mrb[2].mxu1 }
  0xf1   : > { %v414_v20 = vadd.f32 %v923_v12, %v413_v19  ;;  %v473_v26 = vmax.f32 %v411_v16, 0.0  ;;  %v483_v31 = vmax.f32 %v451_v24, 0.0  ;;  %v454_v32 = vadd.f32 %v1009_v29, %v923_v12  ;;  %v445_v33 = vpop.f32.mrb[3].mxu1 }
  0xf2   : > { %v476_v23 = vmax.f32 %v422_v18, 0.0  ;;  %v481_v36 = vmax.f32 %v443_v28, 0.0  ;;  %v446_v37 = vadd.f32 %v923_v12, %v445_v33 }
  0xf3   : > { %v474_v27 = vmax.f32 %v414_v20, 0.0  ;;  %v484_v40 = vmax.f32 %v454_v32, 0.0 }
  0xf4   : > { %v490_v30 = vpack.c.bf16 %v476_v23, %v475_v22  ;;  %v482_v43 = vmax.f32 %v446_v37, 0.0 }
  0xf5   : > { %v489_v34 = vpack.c.bf16 %v474_v27, %v473_v26  ;;  %v1004_v35 = vpop.f32.mrb[4].mxu0  ;;  %v494_v47 = vpack.c.bf16 %v484_v40, %v483_v31 }
  0xf6   : > { %v435_v38 = vadd.f32 %v1004_v35, %v923_v12  ;;  %v426_v39 = vpop.f32.mrb[5].mxu0  ;;  %v493_v50 = vpack.c.bf16 %v482_v43, %v481_v36  ;;  %v1012_v51 = vpop.f32.mrb[4].mxu1 }
  0xf7   : > { %v427_v41 = vadd.f32 %v923_v12, %v426_v39  ;;  %v1005_v42 = vpop.f32.mrb[6].mxu0  ;;  %1018 = vmatprep.mubr.msk.bf16.mxu1 %vm520_vm1, %v489_v34  ;;  %v467_v53 = vadd.f32 %v1012_v51, %v923_v12  ;;  %v458_v54 = vpop.f32.mrb[5].mxu1 }
  0xf8   : > { %v479_v44 = vmax.f32 %v435_v38, 0.0  ;;  %v438_v45 = vadd.f32 %v1005_v42, %v923_v12  ;;  %v429_v46 = vpop.f32.mrb[7].mxu0  ;;  %1019 = vmatmul.mubr.msk.bf16.vlgmr.msra.gmra.mrb[8].mxu1 %vm520_vm1, %v490_v30  ;;  %v459_v56 = vadd.f32 %v923_v12, %v458_v54  ;;  %v1013_v57 = vpop.f32.mrb[6].mxu1 }
  0xf9   : > { %v477_v48 = vmax.f32 %v427_v41, 0.0  ;;  %v430_v49 = vadd.f32 %v923_v12, %v429_v46  ;;  %v487_v59 = vmax.f32 %v467_v53, 0.0  ;;  %v470_v60 = vadd.f32 %v1013_v57, %v923_v12  ;;  %v461_v61 = vpop.f32.mrb[7].mxu1 }
  0xfa   : > { %v480_v52 = vmax.f32 %v438_v45, 0.0  ;;  %v485_v63 = vmax.f32 %v459_v56, 0.0  ;;  %v462_v0 = vadd.f32 %v923_v12, %v461_v61 }
  0xfb   : > { %v478_v55 = vmax.f32 %v430_v49, 0.0  ;;  %v488_v1 = vmax.f32 %v470_v60, 0.0 }
  0xfc   : > { %v492_v58 = vpack.c.bf16 %v480_v52, %v479_v44  ;;  %v486_v2 = vmax.f32 %v462_v0, 0.0 }
  0xfd   : > { %v491_v62 = vpack.c.bf16 %v478_v55, %v477_v48  ;;  %v496_v3 = vpack.c.bf16 %v488_v1, %v487_v59 }
  0xfe   : > { %v495_v4 = vpack.c.bf16 %v486_v2, %v485_v63  ;;  %v952_v63 = vld [vmem:[%s1366_s6] ss:$0 sm:$0xff] }
  0xff   : > { %1022 = vmatprep.mubr.msk.bf16.mxu1 %vm520_vm1, %v491_v62 }
 0x100   : > { %1023 = vmatmul.mubr.msk.bf16.gmra.mrb[12].mxu1 %vm520_vm1, %v492_v58 }
 0x101   : > { %1026 = vmatprep.mubr.msk.bf16.mxu1 %vm520_vm1, %v493_v50 }
 0x108   : > { %1027 = vmatmul.mubr.msk.bf16.gmra.mrb[16].mxu1 %vm520_vm1, %v494_v47 }
 0x109   : > { %1030 = vmatprep.mubr.msk.bf16.mxu1 %vm520_vm1, %v495_v4 }
 0x110   : > { %1031 = vmatmul.mubr.msk.bf16.gmra.mrb[20].mxu1 %vm520_vm1, %v496_v3 }
 0x1cb   : > { %v1020_v7 = vpop.f32.mrb[8].mxu1 }
 0x1cc   : > { %v588_v8 = vadd.f32 %v1020_v7, %v941_v6  ;;  %v579_v9 = vpop.f32.mrb[9].mxu1 }
 0x1cd   : > { %v580_v10 = vadd.f32 %v941_v6, %v579_v9  ;;  %v1021_v11 = vpop.f32.mrb[10].mxu1 }
 0x1ce   : > { %v591_v12 = vadd.f32 %v1021_v11, %v941_v6  ;;  %v582_v13 = vpop.f32.mrb[11].mxu1  ;;  %v644_v15 = vmax.f32 %v588_v8, 0.0 }
 0x1cf   : > { %v583_v14 = vadd.f32 %v941_v6, %v582_v13  ;;  %v642_v17 = vmax.f32 %v580_v10, 0.0 }
 0x1d0   : > { %v645_v16 = vmax.f32 %v591_v12, 0.0 }
 0x1d1   : > { %v643_v18 = vmax.f32 %v583_v14, 0.0 }
 0x1d2   : > { %v659_v19 = vpack.c.bf16 %v645_v16, %v644_v15 }
 0x1d3   : > { %v658_v20 = vpack.c.bf16 %v643_v18, %v642_v17  ;;  %v1024_v21 = vpop.f32.mrb[12].mxu1 }
 0x1d4   : > { %v604_v22 = vadd.f32 %v1024_v21, %v941_v6  ;;  %v595_v23 = vpop.f32.mrb[13].mxu1 }
 0x1d5   : > { %v596_v24 = vadd.f32 %v941_v6, %v595_v23  ;;  %v1025_v25 = vpop.f32.mrb[14].mxu1  ;;  %1038 = vmatprep.mubr.msk.bf16.mxu0 %vm520_vm1, %v658_v20 }
 0x1d6   : > { %v648_v26 = vmax.f32 %v604_v22, 0.0  ;;  %v607_v27 = vadd.f32 %v1025_v25, %v941_v6  ;;  %v598_v28 = vpop.f32.mrb[15].mxu1  ;;  %1039 = vmatmul.mubr.msk.bf16.vlgmr.msra.gmra.mrb[8].mxu0 %vm520_vm1, %v659_v19 }
 0x1d7   : > { %v646_v29 = vmax.f32 %v596_v24, 0.0  ;;  %v599_v30 = vadd.f32 %v941_v6, %v598_v28 }
 0x1d8   : > { %v649_v31 = vmax.f32 %v607_v27, 0.0 }
 0x1d9   : > { %v647_v32 = vmax.f32 %v599_v30, 0.0 }
 0x1da   : > { %v661_v33 = vpack.c.bf16 %v649_v31, %v648_v26 }
 0x1db   : > { %v660_v34 = vpack.c.bf16 %v647_v32, %v646_v29  ;;  %v1028_v35 = vpop.f32.mrb[16].mxu1 }
 0x1dc   : > { %v620_v36 = vadd.f32 %v1028_v35, %v941_v6  ;;  %v611_v37 = vpop.f32.mrb[17].mxu1 }
 0x1dd   : > { %1042 = vmatprep.mubr.msk.bf16.mxu0 %vm520_vm1, %v660_v34  ;;  %v612_v38 = vadd.f32 %v941_v6, %v611_v37  ;;  %v1029_v39 = vpop.f32.mrb[18].mxu1 }
 0x1de   : > { %1043 = vmatmul.mubr.msk.bf16.gmra.mrb[12].mxu0 %vm520_vm1, %v661_v33  ;;  %v652_v40 = vmax.f32 %v620_v36, 0.0  ;;  %v623_v41 = vadd.f32 %v1029_v39, %v941_v6  ;;  %v614_v42 = vpop.f32.mrb[19].mxu1 }
 0x1df   : > { %v650_v43 = vmax.f32 %v612_v38, 0.0  ;;  %v615_v44 = vadd.f32 %v941_v6, %v614_v42 }
 0x1e0   : > { %v653_v45 = vmax.f32 %v623_v41, 0.0 }
 0x1e1   : > { %v651_v46 = vmax.f32 %v615_v44, 0.0 }
 0x1e2   : > { %v663_v47 = vpack.c.bf16 %v653_v45, %v652_v40 }
 0x1e3   : > { %v662_v48 = vpack.c.bf16 %v651_v46, %v650_v43  ;;  %v1032_v49 = vpop.f32.mrb[20].mxu1 }
 0x1e4   : > { %v636_v50 = vadd.f32 %v1032_v49, %v941_v6  ;;  %v627_v51 = vpop.f32.mrb[21].mxu1 }
 0x1e5   : > { %1046 = vmatprep.mubr.msk.bf16.mxu0 %vm520_vm1, %v662_v48  ;;  %v628_v52 = vadd.f32 %v941_v6, %v627_v51  ;;  %v1033_v53 = vpop.f32.mrb[22].mxu1 }
 0x1e6   : > { %1047 = vmatmul.mubr.msk.bf16.gmra.mrb[16].mxu0 %vm520_vm1, %v663_v47  ;;  %v656_v54 = vmax.f32 %v636_v50, 0.0  ;;  %v639_v55 = vadd.f32 %v1033_v53, %v941_v6  ;;  %v630_v56 = vpop.f32.mrb[23].mxu1 }
 0x1e7   : > { %v654_v57 = vmax.f32 %v628_v52, 0.0  ;;  %v631_v58 = vadd.f32 %v941_v6, %v630_v56 }
 0x1e8   : > { %v657_v59 = vmax.f32 %v639_v55, 0.0 }
 0x1e9   : > { %v655_v60 = vmax.f32 %v631_v58, 0.0 }
 0x1ea   : > { %v665_v61 = vpack.c.bf16 %v657_v59, %v656_v54 }
 0x1eb   : > { %v664_v62 = vpack.c.bf16 %v655_v60, %v654_v57 }
 0x1ed   : > { %1050 = vmatprep.mubr.msk.bf16.mxu0 %vm520_vm1, %v664_v62 }
 0x1ee   : > { %1051 = vmatmul.mubr.msk.bf16.gmra.mrb[20].mxu0 %vm520_vm1, %v665_v61 }
 0x2a9   : > { %v1040_v0 = vpop.f32.mrb[8].mxu0 }
 0x2aa   : > { %v747_v1 = vpop.f32.mrb[9].mxu0  ;;  %v756_v8 = vadd.f32 %v1040_v0, %v952_v63 }
 0x2ab   : > { %v1041_v2 = vpop.f32.mrb[10].mxu0  ;;  %v748_v3 = vadd.f32 %v952_v63, %v747_v1 }
 0x2ac   : > { %v750_v4 = vpop.f32.mrb[11].mxu0  ;;  %v759_v11 = vadd.f32 %v1041_v2, %v952_v63 }
 0x2ad   : > { %810 = vxpose.xlu0.b32.start [1/16] (narrow) %v748_v3, 8  ;;  %v751_v5 = vadd.f32 %v952_v63, %v750_v4 }
 0x2b1   : > { %v1044_v6 = vpop.f32.mrb[12].mxu0  ;;  %811 = vxpose.xlu0.b32.cont [2/16] (narrow) %v751_v5, 8 }
 0x2b2   : > { %v763_v7 = vpop.f32.mrb[13].mxu0  ;;  %v772_v20 = vadd.f32 %v1044_v6, %v952_v63 }
 0x2b3   : > { %v1045_v9 = vpop.f32.mrb[14].mxu0  ;;  %v764_v14 = vadd.f32 %v952_v63, %v763_v7 }
 0x2b4   : > { %v766_v10 = vpop.f32.mrb[15].mxu0  ;;  %v775_v23 = vadd.f32 %v1045_v9, %v952_v63 }
 0x2b5   : > { %812 = vxpose.xlu0.b32.cont [3/16] (narrow) %v756_v8, 8  ;;  %v767_v17 = vadd.f32 %v952_v63, %v766_v10 }
 0x2b9   : > { %813 = vxpose.xlu0.b32.cont [4/16] (narrow) %v759_v11, 8  ;;  %v1048_v12 = vpop.f32.mrb[16].mxu0 }
 0x2ba   : > { %v779_v13 = vpop.f32.mrb[17].mxu0  ;;  %v788_v26 = vadd.f32 %v1048_v12, %v952_v63 }
 0x2bb   : > { %v1049_v15 = vpop.f32.mrb[18].mxu0  ;;  %v780_v24 = vadd.f32 %v952_v63, %v779_v13 }
 0x2bc   : > { %v782_v16 = vpop.f32.mrb[19].mxu0  ;;  %v791_v27 = vadd.f32 %v1049_v15, %v952_v63 }
 0x2bd   : > { %814 = vxpose.xlu0.b32.cont [5/16] (narrow) %v764_v14, 8  ;;  %v783_v25 = vadd.f32 %v952_v63, %v782_v16 }
 0x2c1   : > { %815 = vxpose.xlu0.b32.cont [6/16] (narrow) %v767_v17, 8  ;;  %v1052_v18 = vpop.f32.mrb[20].mxu0 }
 0x2c2   : > { %v795_v19 = vpop.f32.mrb[21].mxu0  ;;  %v804_v30 = vadd.f32 %v1052_v18, %v952_v63 }
 0x2c3   : > { %v1053_v21 = vpop.f32.mrb[22].mxu0  ;;  %v796_v28 = vadd.f32 %v952_v63, %v795_v19 }
 0x2c4   : > { %v798_v22 = vpop.f32.mrb[23].mxu0  ;;  %v807_v31 = vadd.f32 %v1053_v21, %v952_v63 }
 0x2c5   : > { %816 = vxpose.xlu0.b32.cont [7/16] (narrow) %v772_v20, 8  ;;  %v799_v29 = vadd.f32 %v952_v63, %v798_v22 }
 0x2c9   : > { %817 = vxpose.xlu0.b32.cont [8/16] (narrow) %v775_v23, 8 }
 0x2cd   : > { %818 = vxpose.xlu0.b32.cont [9/16] (narrow) %v780_v24, 8 }
 0x2d1   : > { %819 = vxpose.xlu0.b32.cont [10/16] (narrow) %v783_v25, 8 }
 0x2d5   : > { %820 = vxpose.xlu0.b32.cont [11/16] (narrow) %v788_v26, 8 }
 0x2d9   : > { %821 = vxpose.xlu0.b32.cont [12/16] (narrow) %v791_v27, 8 }
 0x2dd   : > { %822 = vxpose.xlu0.b32.cont [13/16] (narrow) %v796_v28, 8 }
 0x2e1   : > { %823 = vxpose.xlu0.b32.cont [14/16] (narrow) %v799_v29, 8 }
 0x2e5   : > { %824 = vxpose.xlu0.b32.cont [15/16] (narrow) %v804_v30, 8 }
 0x2e9   : > { %825 = vxpose.xlu0.b32.end [16/16] (narrow) %v807_v31, 8 }
 0x32d   : > { %v826_v32 = vpop.trf.xlu0 }
 0x32e   : > { %842 = vst [vmem:[%s272_s22] sm:$0xff] %v826_v32 }
 0x32f   : > { %1121 = shalt.err (!%p1118_p3)
}
 0x330   : > { %s1122_s18 = scalar_lea.hbm %s1320_s13, 128  ;;  %s1126_s21 = scalar_lea.hbm %s1367_s7, 256 }
 0x331   : > { %p1123_p4 = scmp.ne.s32.totalorder %s1320_s13, %s1122_s18  ;;  %p1127_p9 = scmp.lt.u32.totalorder %s1320_s13, %s1367_s7 }
 0x332   : > { %p1128_p10 = scmp.lt.u32.totalorder %s1126_s21, %s1122_s18  ;;  %p1130_p12 = scmp.lt.u32.totalorder %s1122_s18, %s1320_s13 }
 0x333   : > { %p1124_p7 = pnand %p1123_p4, %p1251_p5 }
 0x334   : > { %p1129_p11 = por %p1128_p10, %p1127_p9 }
 0x335   : > { %p1125_p8 = pneg %p1124_p7 }
 0x336   : > { %p1131_p13 = por %p1130_p12, %p1129_p11 }
 0x338   : > { %p1132_p0 = pnand %p1131_p13, %p1125_p8 }
 0x33a   : > { %1135 = shalt.err (!%p1132_p0)
}
 0x33b   : > { %1056 = dma.vmem_to_hbm [thread:$0]  (%p1251_p5), %s1315_s23, 128, %s1320_s13, %s844_s14  }
 0x33c PF: > { %p1062_p1 = scmp.ge.s32.totalorder %s1170_s27, 2  ;;  %s869_s8 = sand.u32 1, %s1158_s24  }
 0x33d   : > { %s870_s9 = scalar_lea.sflag [#allocation3], %s869_s8 }
 0x33e   : > { %p1059_p2 = pnand %p1062_p1, %p1255_p6 }
 0x340   : > { %1153 = dma.done.wait (!%p1059_p2), %s870_s9, 128  }
 0x341   : > { %1155 = vsyncadd (!%p1059_p2), %s870_s9, 4294967168  ;;  %p17_p3 = scmp.ge.s32.totalorder %s1238_s30, 4   ;;  %s1370_s24 = smov %s1162_s25 }
 0x342   : > { %s1371_s25 = smov %s1166_s26  ;;  %s1372_s26 = smov %s1249_s10 }
 0x343   : > { %s1373_s27 = smov %s1238_s30  ;;  %19 = sbr.rel (!%p17_p3) target bundleno = 3 (0x3), region = 83 }
 0x34a   :  { %875 = vsyncpa [#allocation3], 1 }
 0x34b   :  { %877 = vsyncpa [#allocation3 + $0x1], 1 }

</bundles_post_ra>
